<compile_context>
chip_gen: v7x
topology: tpu7x:2x2x1
jax: 0.10.0
libtpu: 0.0.40
codegen_flags: <defaults>
</compile_context>

<pallas_src>
import functools
import math

import jax
import jax.numpy as jnp
from jax import lax
from jax.experimental import pallas as pl
from jax.experimental.pallas import tpu as pltpu

# MXU operand dtype; accumulation always stays f32 via preferred_element_type.
MXU_DTYPE = jnp.bfloat16


# ----------------------------------------------------------------------------
# Tiled linear: y = x @ W^T + b.  W arrives in torch (N, K) layout and is
# transposed once in the wrapper to (K, N) so the kernel is a plain matmul.
# ----------------------------------------------------------------------------
def _linear_kernel_single(x_ref, w_ref, b_ref, o_ref, *, mxu_dtype):
    # K fits in one block: no accumulator scratch, no pl.when phases.
    acc = jnp.dot(x_ref[...].astype(mxu_dtype), w_ref[...].astype(mxu_dtype),
                  preferred_element_type=jnp.float32)
    o_ref[...] = (acc + b_ref[...]).astype(o_ref.dtype)


def _linear_kernel_acc(x_ref, w_ref, b_ref, o_ref, acc_ref, *, mxu_dtype):
    k = pl.program_id(2)

    @pl.when(k == 0)
    def _():
        acc_ref[...] = jnp.zeros_like(acc_ref)

    acc_ref[...] += jnp.dot(x_ref[...].astype(mxu_dtype),
                            w_ref[...].astype(mxu_dtype),
                            preferred_element_type=jnp.float32)

    @pl.when(k == pl.num_programs(2) - 1)
    def _():
        o_ref[...] = (acc_ref[...] + b_ref[...]).astype(o_ref.dtype)


def _pick_tile(dim, candidates):
    """Largest candidate that evenly divides dim; else the full extent."""
    for c in candidates:
        if dim >= c and dim % c == 0:
            return c
    return dim


def linear(x2d, w, b, *, mxu_dtype=MXU_DTYPE):
    """x2d: (M, K); w: (N, K) torch layout; b: (N,).  Returns (M, N)."""
    M, K = x2d.shape
    N = w.shape[0]
    wt = jnp.asarray(w).astype(jnp.float32).T          # (K, N), one-time transpose
    b2 = jnp.asarray(b).astype(jnp.float32).reshape(1, N)

    # MXU-aligned, lane-dense tiles (multiples of 256/128); small/irregular
    # dims fall back to the full extent (always a legal block).
    tm = _pick_tile(M, (1024, 512, 256, 128))
    tn = _pick_tile(N, (512, 256, 128))
    tk = _pick_tile(K, (512, 256, 128))
    nk = K // tk
    out_shape = jax.ShapeDtypeStruct((M, N), x2d.dtype)

    if nk == 1:
        return pl.pallas_call(
            functools.partial(_linear_kernel_single, mxu_dtype=mxu_dtype),
            out_shape=out_shape,
            grid=(M // tm, N // tn),
            in_specs=[
                pl.BlockSpec((tm, K), lambda i, j: (i, 0)),
                pl.BlockSpec((K, tn), lambda i, j: (0, j)),
                pl.BlockSpec((1, tn), lambda i, j: (0, j)),
            ],
            out_specs=pl.BlockSpec((tm, tn), lambda i, j: (i, j)),
            compiler_params=pltpu.CompilerParams(
                dimension_semantics=("parallel", "parallel")),
        )(x2d, wt, b2)

    return pl.pallas_call(
        functools.partial(_linear_kernel_acc, mxu_dtype=mxu_dtype),
        out_shape=out_shape,
        grid=(M // tm, N // tn, nk),
        in_specs=[
            pl.BlockSpec((tm, tk), lambda i, j, k: (i, k)),
            pl.BlockSpec((tk, tn), lambda i, j, k: (k, j)),
            pl.BlockSpec((1, tn), lambda i, j, k: (0, j)),
        ],
        out_specs=pl.BlockSpec((tm, tn), lambda i, j, k: (i, j)),
        scratch_shapes=[pltpu.VMEM((tm, tn), jnp.float32)],
        compiler_params=pltpu.CompilerParams(
            dimension_semantics=("parallel", "parallel", "arbitrary")),
    )(x2d, wt, b2)


# ----------------------------------------------------------------------------
# Attention kernel: one (batch, head-group, Sq-tile) per grid step.
# ----------------------------------------------------------------------------
def _pick_head_group(H, D):
    """Smallest divisor d of H whose lane width d*D is a multiple of 128."""
    for d in range(1, H + 1):
        if H % d == 0 and (d * D) % 128 == 0:
            return d
    return H     # tiny embed_dim: take all heads (block == full E, still legal)


def _attn_kernel(*refs, hh, head_dim, has_mask, mxu_dtype):
    if has_mask:
        q_ref, k_ref, v_ref, m_ref, ctx_ref, attn_ref = refs
    else:
        q_ref, k_ref, v_ref, ctx_ref, attn_ref = refs
        m_ref = None

    D = head_dim
    qb = q_ref[0]            # (tq, hh*D)   (q already carries the 1/sqrt(D) scale)
    kb = k_ref[0]            # (Sk, hh*D)
    vb = v_ref[0]            # (Sk, hh*D)

    mbias = None
    if has_mask:
        # Hoisted once per grid step; broadcast dims expand inside the kernel.
        mbias = m_ref[0] * jnp.float32(-1e9)        # (mh, mq, msk)

    # Static loop over the small per-step head group (hh <= 128//D or H).
    # This bounds live ranges to hh sets of (tq, Sk) temporaries (instead of
    # all H heads) while keeping the per-head lane slices static.
    ctx_parts = []
    for h in range(hh):
        sl = slice(h * D, (h + 1) * D)
        # QK^T: contract head_dim of both operands; bf16 on the MXU, f32 acc.
        logits = lax.dot_general(
            qb[:, sl].astype(mxu_dtype), kb[:, sl].astype(mxu_dtype),
            (((1,), (1,)), ((), ())),
            preferred_element_type=jnp.float32,
        )                                                    # (tq, Sk)
        if mbias is not None:
            bias = mbias[h] if mbias.shape[0] > 1 else mbias[0]
            logits = logits + bias                           # broadcasts (mq, msk)

        # Exact, numerically stable softmax (module returns these weights).
        mx = jnp.max(logits, axis=-1, keepdims=True)
        e = jnp.exp(logits - mx)
        w = e / jnp.sum(e, axis=-1, keepdims=True)

        attn_ref[0, h] = w                                   # lane-dense (tq, Sk)
        ctx_parts.append(
            jnp.dot(w.astype(mxu_dtype), vb[:, sl].astype(mxu_dtype),
                    preferred_element_type=jnp.float32))

    ctx = ctx_parts[0] if hh == 1 else jnp.concatenate(ctx_parts, axis=-1)
    ctx_ref[0] = ctx.astype(ctx_ref.dtype)                   # one lane-dense store


def scaled_dot_product_attention(qp, kp, vp, num_heads, mask=None,
                                 mxu_dtype=MXU_DTYPE):
    """qp/kp/vp: (B, S, E), qp pre-scaled by 1/sqrt(D).  Returns (ctx, attn)."""
    B, Sq, E = qp.shape
    Sk = kp.shape[1]
    H = num_heads
    D = E // H

    hh = _pick_head_group(H, D)

    # Pick the Sq tile so the double-buffered per-step working set stays under
    # ~24 MiB (safe for v7x's 64 MiB VMEM; generous on v5e/v6e's 128 MiB).
    budget = 24 * 2 ** 20
    cands = [c for c in (1024, 512, 256, 128, 64, 32, 16, 8)
             if c <= Sq and Sq % c == 0] or [Sq]
    tq = cands[-1]
    for c in cands:
        step = (2 * c * hh * D + 2 * Sk * hh * D + 2 * hh * c * Sk) * 4 * 2
        if step <= budget:
            tq = c
            break
    est_bytes = (2 * tq * hh * D + 2 * Sk * hh * D + 2 * hh * tq * Sk) * 4 * 2

    has_mask = mask is not None
    in_specs = [
        pl.BlockSpec((1, tq, hh * D), lambda b, hg, qi: (b, qi, hg)),
        pl.BlockSpec((1, Sk, hh * D), lambda b, hg, qi: (b, 0, hg)),
        pl.BlockSpec((1, Sk, hh * D), lambda b, hg, qi: (b, 0, hg)),
    ]
    inputs = [qp, kp, vp]

    if has_mask:
        m = jnp.asarray(mask, jnp.float32)
        if m.ndim == 2:
            m = m[None, None]
        elif m.ndim == 3:
            m = m[:, None]
        Bm, Hm, Sqm, Skm = (int(d) for d in m.shape)
        # Stream the mask with its singleton (broadcast) dims intact; never
        # materialize a (B, H, Sq, Sk) mask in HBM.
        mb_h = hh if Hm == H else 1
        mb_q = tq if Sqm == Sq else 1
        mb_k = Sk if Skm == Sk else 1

        def m_index(b, hg, qi, _Bm=Bm, _Hm=Hm, _Sqm=Sqm):
            return (b if _Bm > 1 else 0,
                    hg if _Hm > 1 else 0,
                    qi if _Sqm > 1 else 0,
                    0)

        in_specs.append(pl.BlockSpec((1, mb_h, mb_q, mb_k), m_index))
        inputs.append(m)

    kernel = functools.partial(_attn_kernel, hh=hh, head_dim=D,
                               has_mask=has_mask, mxu_dtype=mxu_dtype)

    ctx, attn = pl.pallas_call(
        kernel,
        out_shape=(
            jax.ShapeDtypeStruct((B, Sq, E), qp.dtype),
            jax.ShapeDtypeStruct((B, H, Sq, Sk), jnp.float32),
        ),
        grid=(B, H // hh, Sq // tq),
        in_specs=in_specs,
        out_specs=(
            pl.BlockSpec((1, tq, hh * D), lambda b, hg, qi: (b, qi, hg)),
            pl.BlockSpec((1, hh, tq, Sk), lambda b, hg, qi: (b, hg, qi, 0)),
        ),
        compiler_params=pltpu.CompilerParams(
            # All axes write disjoint output blocks -> fully parallel
            # (sharded across v7x's two TensorCores; no-op on v5e/v6e).
            dimension_semantics=("parallel", "parallel", "parallel"),
            vmem_limit_bytes=int(min(max(2 * est_bytes, 32 * 2 ** 20),
                                     48 * 2 ** 20)),
        ),
    )(*inputs)
    return ctx, attn


# ----------------------------------------------------------------------------
# Full MultiHeadAttention forward (mirrors the PyTorch module).
# ----------------------------------------------------------------------------
def multi_head_attention(q, k, v, params, num_heads, mask=None):
    B, Sq, E = q.shape
    Sk = k.shape[1]
    D = E // num_heads
    assert D * num_heads == E

    # Fold the 1/sqrt(D) softmax scale into the (jit-constant) q projection.
    scale = 1.0 / math.sqrt(D)
    wq_w = jnp.asarray(params["wq_w"], jnp.float32) * scale
    wq_b = jnp.asarray(params["wq_b"], jnp.float32) * scale

    if (q is k) and (k is v):
        # Self-attention: fuse wq/wk/wv into a single (3E, E) projection.
        w_qkv = jnp.concatenate(
            [wq_w,
             jnp.asarray(params["wk_w"], jnp.float32),
             jnp.asarray(params["wv_w"], jnp.float32)], axis=0)
        b_qkv = jnp.concatenate(
            [wq_b,
             jnp.asarray(params["wk_b"], jnp.float32),
             jnp.asarray(params["wv_b"], jnp.float32)], axis=0)
        qkv = linear(q.reshape(B * Sq, E), w_qkv, b_qkv)            # (B*Sq, 3E)
        qp, kp, vp = (t.reshape(B, Sq, E) for t in jnp.split(qkv, 3, axis=-1))
    else:
        qp = linear(q.reshape(B * Sq, E), wq_w, wq_b).reshape(B, Sq, E)
        kp = linear(k.reshape(B * Sk, E), params["wk_w"],
                    params["wk_b"]).reshape(B, Sk, E)
        vp = linear(v.reshape(B * Sk, E), params["wv_w"],
                    params["wv_b"]).reshape(B, Sk, E)

    # split_heads / merge_heads happen inside the attention kernel.
    ctx, attn = scaled_dot_product_attention(qp, kp, vp, num_heads, mask=mask)

    out = linear(ctx.reshape(B * Sq, E), params["dense_w"], params["dense_b"])
    return out.reshape(B, Sq, E), attn


# ----------------------------------------------------------------------------
# Pure-JAX reference (mirrors the PyTorch forward) for correctness checking.
# ----------------------------------------------------------------------------
def _ref_mha(q, k, v, params, num_heads, mask=None):
    B, Sq, E = q.shape
    Sk = k.shape[1]
    D = E // num_heads
    lin = lambda x, w, b: x @ w.T + b
    qp = lin(q, params["wq_w"], params["wq_b"])
    kp = lin(k, params["wk_w"], params["wk_b"])
    vp = lin(v, params["wv_w"], params["wv_b"])
    q4 = qp.reshape(B, Sq, num_heads, D).transpose(0, 2, 1, 3)
    k4 = kp.reshape(B, Sk, num_heads, D).transpose(0, 2, 1, 3)
    v4 = vp.reshape(B, Sk, num_heads, D).transpose(0, 2, 1, 3)
    logits = jnp.einsum("bhqd,bhkd->bhqk", q4, k4) / jnp.sqrt(jnp.float32(D))
    if mask is not None:
        logits = logits + mask * (-1e9)
    attn = jax.nn.softmax(logits, axis=-1)
    out4 = jnp.einsum("bhqk,bhkd->bhqd", attn, v4)
    merged = out4.transpose(0, 2, 1, 3).reshape(B, Sq, E)
    return lin(merged, params["dense_w"], params["dense_b"]), attn


# ----------------------------------------------------------------------------
# Main
# ----------------------------------------------------------------------------
if __name__ == "__main__":
    B, S, E, H = 2, 8, 32, 4

    key = jax.random.PRNGKey(0)
    ks = jax.random.split(key, 16)

    def init_linear(kw, kb, fan_in, fan_out):
        bound = 1.0 / (fan_in ** 0.5)
        w = jax.random.uniform(kw, (fan_out, fan_in), jnp.float32, -bound, bound)
        b = jax.random.uniform(kb, (fan_out,), jnp.float32, -bound, bound)
        return w, b

    params = {}
    params["wq_w"], params["wq_b"] = init_linear(ks[0], ks[1], E, E)
    params["wk_w"], params["wk_b"] = init_linear(ks[2], ks[3], E, E)
    params["wv_w"], params["wv_b"] = init_linear(ks[4], ks[5], E, E)
    params["dense_w"], params["dense_b"] = init_linear(ks[6], ks[7], E, E)

    q_in = jax.random.normal(ks[8], (B, S, E), jnp.float32)
    k_in = jax.random.normal(ks[9], (B, S, E), jnp.float32)
    v_in = jax.random.normal(ks[10], (B, S, E), jnp.float32)

    # causal mask (1 = masked, as in the torch code), broadcast over batch/head
    causal = (jnp.arange(S)[:, None] < jnp.arange(S)[None, :]).astype(
        jnp.float32).reshape(1, 1, S, S)

    # masked cross-attention path
    out_m, attn_m = multi_head_attention(q_in, k_in, v_in, params, H, mask=causal)
    # unmasked path (mask input + bias add skipped entirely)
    out_n, attn_n = multi_head_attention(q_in, k_in, v_in, params, H, mask=None)
    # self-attention path (exercises the fused (3E, E) QKV projection)
    out_s, attn_s = multi_head_attention(q_in, q_in, q_in, params, H, mask=causal)
    jax.block_until_ready((out_m, attn_m, out_n, attn_n, out_s, attn_s))

    ref_m, refw_m = _ref_mha(q_in, k_in, v_in, params, H, mask=causal)
    ref_n, refw_n = _ref_mha(q_in, k_in, v_in, params, H, mask=None)
    ref_s, refw_s = _ref_mha(q_in, q_in, q_in, params, H, mask=causal)

    assert out_m.shape == (B, S, E) and attn_m.shape == (B, H, S, S)
    assert out_n.shape == (B, S, E) and attn_n.shape == (B, H, S, S)
    assert out_s.shape == (B, S, E) and attn_s.shape == (B, H, S, S)

    # Tolerance absorbs the bf16 MXU operands (accumulation stays f32).
    tol = dict(atol=5e-2, rtol=5e-2)
    assert jnp.allclose(out_m, ref_m, **tol)
    assert jnp.allclose(attn_m, refw_m, **tol)
    assert jnp.allclose(out_n, ref_n, **tol)
    assert jnp.allclose(attn_n, refw_n, **tol)
    assert jnp.allclose(out_s, ref_s, **tol)
    assert jnp.allclose(attn_s, refw_s, **tol)

    print("KERNEL_OK")
</pallas_src>

<mosaic_0001>
module attributes {stable_mosaic.version = 11 : i64} {
  func.func @_linear_kernel_single(%arg0: i32, %arg1: i32, %arg2: memref<16x32xf32, #tpu.memory_space<vmem>>, %arg3: memref<32x32xf32, #tpu.memory_space<vmem>>, %arg4: memref<1x32xf32, #tpu.memory_space<vmem>>, %arg5: memref<16x32xf32, #tpu.memory_space<vmem>>) attributes {dimension_semantics = [#tpu.dimension_semantics<parallel>, #tpu.dimension_semantics<parallel>], iteration_bounds = array<i64: 1, 1>, scalar_prefetch = 0 : i64, scratch_operands = 0 : i64, tpu.core_type = #tpu.core_type<tc>, window_params = [{transform_indices = @transform_0, window_bounds = array<i64: 16, 32>}, {transform_indices = @transform_1, window_bounds = array<i64: 32, 32>}, {transform_indices = @transform_2, window_bounds = array<i64: 1, 32>}, {transform_indices = @transform_3, window_bounds = array<i64: 16, 32>}]} {
    %c0 = arith.constant 0 : index
    %c0_0 = arith.constant 0 : index
    %0 = vector.load %arg2[%c0, %c0_0] : memref<16x32xf32, #tpu.memory_space<vmem>>, vector<16x32xf32>
    %1 = arith.truncf %0 : vector<16x32xf32> to vector<16x32xbf16>
    %c0_1 = arith.constant 0 : index
    %c0_2 = arith.constant 0 : index
    %2 = vector.load %arg3[%c0_1, %c0_2] : memref<32x32xf32, #tpu.memory_space<vmem>>, vector<32x32xf32>
    %3 = arith.truncf %2 : vector<32x32xf32> to vector<32x32xbf16>
    %cst = arith.constant dense<0.000000e+00> : vector<16x32xf32>
    %4 = tpu.matmul %1, %3, %cst {dimension_numbers = #tpu.dot_dimension_numbers<[1], [0], [0], [1], [0, 0, 1, 1], [], []>} : vector<16x32xbf16>, vector<32x32xbf16>, vector<16x32xf32> -> vector<16x32xf32>
    %c0_3 = arith.constant 0 : index
    %c0_4 = arith.constant 0 : index
    %5 = vector.load %arg4[%c0_3, %c0_4] : memref<1x32xf32, #tpu.memory_space<vmem>>, vector<1x32xf32>
    %6 = vector.broadcast %5 : vector<1x32xf32> to vector<16x32xf32>
    %7 = arith.addf %4, %6 : vector<16x32xf32>
    %c0_5 = arith.constant 0 : index
    %c0_6 = arith.constant 0 : index
    %8 = vector.load %arg5[%c0_5, %c0_6] : memref<16x32xf32, #tpu.memory_space<vmem>>, vector<16x32xf32>
    tpu.vector_store %arg5[%c0_5, %c0_6], %7 {strides = array<i32>} : memref<16x32xf32, #tpu.memory_space<vmem>>, vector<16x32xf32>,
    return
  }
  func.func @transform_0(%arg0: i32, %arg1: i32) -> (i32, i32) {
    %c0_i32 = arith.constant 0 : i32
    %c0_i32_0 = arith.constant 0 : i32
    return %arg0, %c0_i32 : i32, i32
  }
  func.func @transform_1(%arg0: i32, %arg1: i32) -> (i32, i32) {
    %c0_i32 = arith.constant 0 : i32
    %c0_i32_0 = arith.constant 0 : i32
    return %c0_i32, %arg1 : i32, i32
  }
  func.func @transform_2(%arg0: i32, %arg1: i32) -> (i32, i32) {
    %c0_i32 = arith.constant 0 : i32
    %c0_i32_0 = arith.constant 0 : i32
    return %c0_i32, %arg1 : i32, i32
  }
  func.func @transform_3(%arg0: i32, %arg1: i32) -> (i32, i32) {
    %c0_i32 = arith.constant 0 : i32
    return %arg0, %arg1 : i32, i32
  }
}

</mosaic_0001>

<bundles_post_ra>
// kernel: tpu_custom_call.1
= control target key start
LH: loop header
LB: loop body
LE: loop exit
PB: predicated region body
PF: predicated region fallthrough
CT: control target
= control target key end

     0   :  { %8 = vsyncpa [#allocation3], 0  ;;  %s292_s0 = inlined_call_operand.hbm [shape: f32[16,32], index: 0, kind: input, shape index: {}]   ;;  %s293_s1 = inlined_call_operand.hbm [shape: f32[32,32], index: 1, kind: input, shape index: {}]   ;;  %s294_s2 = inlined_call_operand.vmem [shape: f32[1,32], index: 2, kind: input, shape index: {}]   ;;  %s295_s3 = inlined_call_operand.hbm [shape: f32[16,32], index: 3, kind: output, shape index: {}]  }
   0x1   :  { %9 = vsyncpa [#allocation6], 0 }
   0x2   :  { %10 = vsyncpa [#allocation4], 0  ;;  %s217_s12 = smov [#allocation2]   ;;  %s145_s16 = scalar_lea.hbm %s292_s0, 256 }
   0x3   :  { %s16_s13 = sshll.u32 %s217_s12, 4  ;;  %p146_p0 = scmp.ne.s32.totalorder %s292_s0, %s145_s16  ;;  %s17_s13 = int_to_ptr.vmem [resolvable:$true] %s16_s13 }
   0x4   :  { %p149_p1 = scmp.lt.u32.totalorder %s145_s16, %s292_s0 }
   0x6   :  { %p151_p2 = pnand %p149_p1, %p146_p0 }
   0x8   :  { %154 = shalt.err (!%p151_p2)
}
   0x9   :  { %s155_s21 = scalar_lea.vmem %s17_s13, 256  ;;  %p160_p4 = scmp.lt.s32.totalorder %s17_s13, %s17_s13 }
   0xa   :  { %p156_p3 = scmp.ne.s32.totalorder %s17_s13, %s155_s21  ;;  %p161_p5 = scmp.lt.s32.totalorder %s155_s21, %s155_s21 }
   0xc   :  { %p162_p6 = por %p161_p5, %p160_p4 }
   0xe   :  { %p163_p7 = pnand %p162_p6, %p156_p3 }
  0x10   :  { %166 = shalt.err (!%p163_p7)
}
  0x11   :  { %s218_s22 = smov 128   ;;  %s219_s23 = smov 8  }
  0x12   :  { %22 = dma.hbm_to_vmem [thread:$0]  %s292_s0, 256, %s17_s13, [#allocation3], %s218_s22, %s218_s22, %s219_s23  }
  0x13   :  { %s220_s26 = smov [#allocation5]   ;;  %s167_s30 = scalar_lea.hbm %s293_s1, 512 }
  0x14   :  { %s28_s27 = sshll.u32 %s220_s26, 4  ;;  %p168_p8 = scmp.ne.s32.totalorder %s293_s1, %s167_s30  ;;  %s29_s27 = int_to_ptr.vmem [resolvable:$true] %s28_s27 }
  0x15   :  { %p171_p9 = scmp.lt.u32.totalorder %s167_s30, %s293_s1 }
  0x17   :  { %p173_p10 = pnand %p171_p9, %p168_p8 }
  0x19   :  { %176 = shalt.err (!%p173_p10)
}
  0x1a   :  { %s177_s8 = scalar_lea.vmem %s29_s27, 512  ;;  %p182_p12 = scmp.lt.s32.totalorder %s29_s27, %s29_s27 }
  0x1b   :  { %p178_p11 = scmp.ne.s32.totalorder %s29_s27, %s177_s8  ;;  %p183_p13 = scmp.lt.s32.totalorder %s177_s8, %s177_s8 }
  0x1d   :  { %p184_p0 = por %p183_p13, %p182_p12 }
  0x1f   :  { %p185_p1 = pnand %p184_p0, %p178_p11 }
  0x21   :  { %188 = shalt.err (!%p185_p1)
}
  0x22   :  { %34 = dma.hbm_to_vmem [thread:$0]  %s293_s1, 512, %s29_s27, [#allocation6], %s218_s22, %s218_s22, %s219_s23  }
  0x23   :  { %211 = dma.done.wait [#allocation3], 256  }
  0x24   :  { %212 = vsyncadd [#allocation3], 4294967040 }
  0x25   :  { %213 = dma.done.wait [#allocation6], 512  }
  0x26   :  { %214 = vsyncadd [#allocation6], 4294966784  ;;  %v221_v0 = vmov 0.0   ;;  %vm222_vm0 = vmmov 0   ;;  %v47_v1 = vld [vmem:[#allocation5] sm:$0xff]  ;;  %v48_v2 = vld [vmem:[#allocation5 + $0x8] sm:$0xff] }
  0x27   :  { %130 = vmatprep.subr.bf16.mxu0 %v221_v0  ;;  %134 = vmatprep.mubr.msk.bf16.mxu0 %vm222_vm0, %v221_v0  ;;  %v49_v3 = vld [vmem:[#allocation5 + $0x10] sm:$0xff]  ;;  %v51_v4 = vpack.c.bf16 %v48_v2, %v47_v1  ;;  %v50_v5 = vld [vmem:[#allocation5 + $0x18] sm:$0xff]  ;;  %vm60_vm1 = vcmask 261120   ;;  %s223_s11 = smov [#allocation7]  }
  0x28   :  { %v52_v6 = vpack.c.bf16 %v50_v5, %v49_v3  ;;  %v44_v7 = vld [vmem:[#allocation2] sm:$0xff]  ;;  %v45_v8 = vld [vmem:[#allocation2 + $0x8] sm:$0xff]  ;;  %s112_s12 = sshll.u32 %s223_s11, 4  ;;  %s113_s12 = int_to_ptr.vmem [resolvable:$true] %s112_s12 }
  0x29   :  { %131 = vmatpush3.bf16.msra.mxu0 %v51_v4  ;;  %v46_v9 = vpack.c.bf16 %v45_v8, %v44_v7  ;;  %v125_v10 = vld [vmem:[%s294_s2] ss:$0 sm:$0xff]  ;;  %s189_s13 = scalar_lea.vmem %s113_s12, 256  ;;  %p194_p3 = scmp.lt.s32.totalorder %s113_s12, %s113_s12 }
  0x2a   :  { %132 = vmatprep.subr.bf16.mxu0 %v221_v0  ;;  %p190_p2 = scmp.ne.s32.totalorder %s113_s12, %s189_s13  ;;  %p195_p4 = scmp.lt.s32.totalorder %s189_s13, %s189_s13 }
  0x2c   :  { %p196_p5 = por %p195_p4, %p194_p3 }
  0x2d   :  { %133 = vmatpush3.bf16.msra.mxu0 %v52_v6 }
  0x2e   :  { %p197_p6 = pnand %p196_p5, %p190_p2 }
  0x30   :  { %135 = vmatmul.mubr.msk.bf16.vlgmr.msra.gmra.mrb[0].mxu0 %vm60_vm1, %v46_v9 }
 0x103   :  { %v98_v11 = vpop.f32.mrb[0].mxu0 }
 0x104   :  { %v99_v12 = vadd.f32 %v125_v10, %v98_v11  ;;  %v136_v13 = vpop.f32.mrb[1].mxu0 }
 0x105   :  { %v101_v14 = vpop.f32.mrb[2].mxu0 }
 0x106   :  { %105 = vst.msk [vmem:[#allocation7] sm:$0xff] %vm60_vm1, %v99_v12  ;;  %v102_v15 = vadd.f32 %v125_v10, %v101_v14  ;;  %v137_v16 = vpop.f32.mrb[3].mxu0 }
 0x108   :  { %106 = vst.msk [vmem:[#allocation7 + $0x8] sm:$0xff] %vm60_vm1, %v102_v15 }
 0x109   :  { %200 = shalt.err (!%p197_p6)
}
 0x10a   :  { %s201_s15 = scalar_lea.hbm %s295_s3, 256 }
 0x10b   :  { %p202_p7 = scmp.ne.s32.totalorder %s295_s3, %s201_s15  ;;  %p205_p8 = scmp.lt.u32.totalorder %s201_s15, %s295_s3 }
 0x10d   :  { %p207_p9 = pnand %p205_p8, %p202_p7 }
 0x10f   :  { %210 = shalt.err (!%p207_p9)
}
 0x110   :  { %118 = dma.vmem_to_hbm [thread:$0]  %s113_s12, 256, %s295_s3, [#allocation4], %s218_s22, %s218_s22, %s219_s23  }
 0x111   :  { %215 = dma.done.wait [#allocation4], 256  }
 0x112   :  { %216 = vsyncadd [#allocation4], 4294967040 }
 0x113   :  { %122 = vsyncpa [#allocation3], 1 }
 0x114   :  { %123 = vsyncpa [#allocation6], 1 }
 0x115   :  { %124 = vsyncpa [#allocation4], 1 }

</bundles_post_ra>
